<compile_context>
chip_gen: v7x
topology: tpu7x:2x2x1
jax: 0.10.0
libtpu: 0.0.40
codegen_flags: <defaults>
</compile_context>

<pallas_src>
import functools

import jax
import jax.numpy as jnp
from jax.experimental import pallas as pl
from jax.experimental.pallas import tpu as pltpu


# ----------------------------- activation f -----------------------------
def f_act(x):
    # SiLU / swish: x * sigmoid(x)
    return x * jax.nn.sigmoid(x)


# --------------------------- moment / cst (glue) -------------------------
def compute_cst(f, n_samples: int = 1_000_000) -> float:
    """cst = 1 / sqrt(<f(z)^2>) for z ~ N(0,1). Deterministic via PRNGKey(0)."""
    z = jax.random.normal(jax.random.PRNGKey(0), (n_samples,), dtype=jnp.float32)
    second_moment = jnp.mean(f(z) ** 2)
    return float(1.0 / jnp.sqrt(second_moment))


# ------------------------------ Pallas kernel ----------------------------
def _norm2mom_kernel(x_ref, o_ref, *, cst: float, apply_cst: bool):
    x = x_ref[...]
    # f32 compute keeps v5e happy (no bf16 VPU/EUP there); for f32 inputs the
    # astype is a no-op.  If the real model runs bf16 end-to-end on v6e/v7x,
    # dropping this upcast halves bytes/vregs for this memory-bound op.
    xf = x.astype(jnp.float32)
    y = xf * jax.nn.sigmoid(xf)
    if apply_cst:
        y = y * jnp.float32(cst)   # compile-time constant -> constant vreg
    o_ref[...] = y.astype(o_ref.dtype)


# ------------------------------ wrapper ----------------------------------
def normalize2mom_forward(x: jax.Array, cst: float) -> jax.Array:
    """Apply normalize2mom(f=SiLU) to an arbitrary-shape tensor via Pallas."""
    is_id = abs(cst - 1.0) < 1e-4  # mirrors the module's _is_id logic

    orig_shape = x.shape
    orig_dtype = x.dtype
    total = x.size
    itemsize = jnp.dtype(orig_dtype).itemsize

    # --- pick a wide lane-dense column width (prefer no padding at all) ---
    W = 128
    for cand in (1024, 512, 256, 128):
        if total % cand == 0:
            W = cand
            break

    rows = -(-total // W)

    # --- pick row-tile: ~1 MiB per block, multiple of 8 sublanes ----------
    target_block_bytes = 1 << 20  # 1 MiB -> <=4 MiB live with double-buffered in+out
    tile_rows = max(8, (target_block_bytes // (W * itemsize)) // 8 * 8)
    if tile_rows >= rows:
        # Single block covering the whole (small) array; block_shape equal to
        # the full array dims is always legal, even if rows % 8 != 0.
        tile_rows = rows
        rows_padded = rows
    else:
        rows_padded = -(-rows // tile_rows) * tile_rows

    pad_total = rows_padded * W - total

    x_flat = jnp.reshape(x, (-1,))
    if pad_total:
        # TODO(synk): ragged tail could be masked in-kernel instead of padded;
        # for typical NCHW activation sizes W divides total and this is skipped.
        x_flat = jnp.pad(x_flat, (0, pad_total))
    x2d = jnp.reshape(x_flat, (rows_padded, W))

    kernel = functools.partial(_norm2mom_kernel, cst=float(cst),
                               apply_cst=not is_id)

    out2d = pl.pallas_call(
        kernel,
        out_shape=jax.ShapeDtypeStruct((rows_padded, W), orig_dtype),
        grid=(rows_padded // tile_rows,),
        in_specs=[pl.BlockSpec((tile_rows, W), lambda i: (i, 0))],
        out_specs=pl.BlockSpec((tile_rows, W), lambda i: (i, 0)),
        compiler_params=pltpu.CompilerParams(
            dimension_semantics=("parallel",)),
    )(x2d)

    out_flat = jnp.reshape(out2d, (-1,))
    if pad_total:
        out_flat = out_flat[:total]
    return jnp.reshape(out_flat, orig_shape)


# --------------------------------- main ----------------------------------
if __name__ == "__main__":
    # Deterministic parameter-free setup: cst from Monte Carlo moment of SiLU.
    cst = compute_cst(f_act)

    # Small NCHW input consistent with a conv-style activation usage.
    key = jax.random.PRNGKey(0)
    x = jax.random.normal(key, (2, 4, 16, 16), dtype=jnp.float32)

    out = normalize2mom_forward(x, cst)
    out = jax.block_until_ready(out)

    # Reference check in plain JAX.
    ref = f_act(x) * (cst if abs(cst - 1.0) >= 1e-4 else 1.0)
    assert out.shape == x.shape and out.dtype == x.dtype
    assert jnp.max(jnp.abs(out - ref)) < 1e-5

    print("KERNEL_OK")
</pallas_src>

<mosaic_0001>
module attributes {stable_mosaic.version = 11 : i64} {
  func.func @_norm2mom_kernel(%arg0: i32, %arg1: memref<2x1024xf32, #tpu.memory_space<vmem>>, %arg2: memref<2x1024xf32, #tpu.memory_space<vmem>>) attributes {dimension_semantics = [#tpu.dimension_semantics<parallel>], iteration_bounds = array<i64: 1>, scalar_prefetch = 0 : i64, scratch_operands = 0 : i64, tpu.core_type = #tpu.core_type<tc>, window_params = [{transform_indices = @transform_0, window_bounds = array<i64: 2, 1024>}, {transform_indices = @transform_1, window_bounds = array<i64: 2, 1024>}]} {
    %c0 = arith.constant 0 : index
    %c0_0 = arith.constant 0 : index
    %0 = vector.load %arg1[%c0, %c0_0] : memref<2x1024xf32, #tpu.memory_space<vmem>>, vector<2x1024xf32>
    %1 = arith.negf %0 : vector<2x1024xf32>
    %2 = math.exp %1 : vector<2x1024xf32>
    %cst = arith.constant 1.000000e+00 : f32
    %3 = vector.broadcast %cst : f32 to vector<2x1024xf32>
    %4 = arith.addf %3, %2 : vector<2x1024xf32>
    %5 = arith.divf %3, %4 : vector<2x1024xf32>
    %6 = arith.mulf %0, %5 : vector<2x1024xf32>
    %cst_1 = arith.constant 1.67994988 : f32
    %7 = vector.broadcast %cst_1 : f32 to vector<2x1024xf32>
    %8 = arith.mulf %6, %7 : vector<2x1024xf32>
    %c0_2 = arith.constant 0 : index
    %c0_3 = arith.constant 0 : index
    %9 = vector.load %arg2[%c0_2, %c0_3] : memref<2x1024xf32, #tpu.memory_space<vmem>>, vector<2x1024xf32>
    tpu.vector_store %arg2[%c0_2, %c0_3], %8 {strides = array<i32>} : memref<2x1024xf32, #tpu.memory_space<vmem>>, vector<2x1024xf32>,
    return
  }
  func.func @transform_0(%arg0: i32) -> (i32, i32) {
    %c0_i32 = arith.constant 0 : i32
    %c0_i32_0 = arith.constant 0 : i32
    return %arg0, %c0_i32 : i32, i32
  }
  func.func @transform_1(%arg0: i32) -> (i32, i32) {
    %c0_i32 = arith.constant 0 : i32
    %c0_i32_0 = arith.constant 0 : i32
    return %arg0, %c0_i32 : i32, i32
  }
}

</mosaic_0001>

<bundles_post_ra>
// kernel: tpu_custom_call.1
= control target key start
LH: loop header
LB: loop body
LE: loop exit
PB: predicated region body
PF: predicated region fallthrough
CT: control target
= control target key end

     0   :  { %6 = vsyncpa [#allocation3], 0  ;;  %s152_s0 = inlined_call_operand.hbm [shape: f32[2,1024], index: 0, kind: input, shape index: {}]   ;;  %s153_s1 = inlined_call_operand.hbm [shape: f32[2,1024], index: 1, kind: output, shape index: {}]  }
   0x1   :  { %7 = vsyncpa [#allocation4], 0  ;;  %s116_s6 = smov [#allocation2]   ;;  %s68_s10 = scalar_lea.hbm %s152_s0, 256 }
   0x2   :  { %s14_s7 = sshll.u32 %s116_s6, 4  ;;  %p69_p0 = scmp.ne.s32.totalorder %s152_s0, %s68_s10  ;;  %s15_s7 = int_to_ptr.vmem [resolvable:$true] %s14_s7 }
   0x3   :  { %p72_p1 = scmp.lt.u32.totalorder %s68_s10, %s152_s0 }
   0x5   :  { %p74_p2 = pnand %p72_p1, %p69_p0 }
   0x7   :  { %77 = shalt.err (!%p74_p2)
}
   0x8   :  { %s78_s15 = scalar_lea.vmem %s15_s7, 256  ;;  %p83_p4 = scmp.lt.s32.totalorder %s15_s7, %s15_s7 }
   0x9   :  { %p79_p3 = scmp.ne.s32.totalorder %s15_s7, %s78_s15  ;;  %p84_p5 = scmp.lt.s32.totalorder %s78_s15, %s78_s15 }
   0xb   :  { %p85_p6 = por %p84_p5, %p83_p4 }
   0xd   :  { %p86_p7 = pnand %p85_p6, %p79_p3 }
   0xf   :  { %89 = shalt.err (!%p86_p7)
}
  0x10   :  { %17 = dma.hbm_to_vmem [thread:$0]  %s152_s0, 256, %s15_s7, [#allocation3]  }
  0x11   :  { %112 = dma.done.wait [#allocation3], 256  }
  0x12   :  { %113 = vsyncadd [#allocation3], 4294967040  ;;  %v21_v0 = vld [vmem:[#allocation2] sm:$0xff]  ;;  %v22_v1 = vld [vmem:[#allocation2 + $0x8] sm:$0xff]  ;;  %s117_s18 = smov [#allocation5]  }
  0x13   :  { %v56_v2 = vmul.f32 -1.442695, %v21_v0  ;;  %v57_v3 = vmul.f32 -1.442695, %v22_v1  ;;  %s47_s19 = sshll.u32 %s117_s18, 4  ;;  %s48_s19 = int_to_ptr.vmem [resolvable:$true] %s47_s19 }
  0x14   :  { %s90_s0 = scalar_lea.vmem %s48_s19, 256  ;;  %p95_p9 = scmp.lt.s32.totalorder %s48_s19, %s48_s19 }
  0x15   :  { %60 = vpow2.f32 %v56_v2  ;;  %p91_p8 = scmp.ne.s32.totalorder %s48_s19, %s90_s0  ;;  %p96_p10 = scmp.lt.s32.totalorder %s90_s0, %s90_s0 }
  0x16   :  { %62 = vpow2.f32 %v57_v3 }
  0x17   :  { %p97_p11 = por %p96_p10, %p95_p9 }
  0x19   :  { %p98_p12 = pnand %p97_p11, %p91_p8 }
  0x1f   :  { %v61_v4 = vpop.eup %60 }
  0x20   :  { %v63_v5 = vpop.eup %62  ;;  %v29_v6 = vadd.f32 1.0, %v61_v4 }
  0x21   :  { %v30_v7 = vadd.f32 1.0, %v63_v5 }
  0x22   :  { %64 = vrcp.f32 %v29_v6 }
  0x23   :  { %66 = vrcp.f32 %v30_v7 }
  0x2c   :  { %v65_v8 = vpop.eup %64 }
  0x2d   :  { %v67_v9 = vpop.eup %66  ;;  %v35_v10 = vmul.f32 %v65_v8, %v21_v0 }
  0x2e   :  { %v36_v11 = vmul.f32 %v67_v9, %v22_v1 }
  0x2f   :  { %v37_v12 = vmul.f32 1.6799499, %v35_v10 }
  0x30   :  { %v38_v13 = vmul.f32 1.6799499, %v36_v11 }
  0x31   :  { %39 = vst [vmem:[#allocation5] sm:$0xff] %v37_v12 }
  0x32   :  { %40 = vst [vmem:[#allocation5 + $0x8] sm:$0xff] %v38_v13 }
  0x33   :  { %101 = shalt.err (!%p98_p12)
}
  0x34   :  { %s102_s22 = scalar_lea.hbm %s153_s1, 256 }
  0x35   :  { %p103_p13 = scmp.ne.s32.totalorder %s153_s1, %s102_s22  ;;  %p106_p0 = scmp.lt.u32.totalorder %s102_s22, %s153_s1 }
  0x37   :  { %p108_p1 = pnand %p106_p0, %p103_p13 }
  0x39   :  { %111 = shalt.err (!%p108_p1)
}
  0x3a   :  { %50 = dma.vmem_to_hbm [thread:$0]  %s48_s19, 256, %s153_s1, [#allocation4]  }
  0x3b   :  { %114 = dma.done.wait [#allocation4], 256  }
  0x3c   :  { %115 = vsyncadd [#allocation4], 4294967040 }
  0x3d   :  { %54 = vsyncpa [#allocation3], 1 }
  0x3e   :  { %55 = vsyncpa [#allocation4], 1 }

</bundles_post_ra>
